<compile_context>
chip_gen: v7x
topology: tpu7x:2x2x1
jax: 0.10.0
libtpu: 0.0.40
codegen_flags: <defaults>
</compile_context>

<pallas_src>
import functools
import math

import jax
import jax.numpy as jnp
from jax.experimental import pallas as pl
from jax.experimental.pallas import tpu as pltpu

LN_EPS = 1e-12
VMEM_LIMIT = 64 * 1024 * 1024


def _layernorm(x, g, b):
    # x, g, b are float32; biased variance, eps=1e-12 (HF BERT semantics).
    u = jnp.mean(x, axis=-1, keepdims=True)
    s = jnp.mean((x - u) ** 2, axis=-1, keepdims=True)
    return (x - u) * jax.lax.rsqrt(s + LN_EPS) * g + b


def _gelu(x):
    # original BERT gelu: x * 0.5 * (1 + erf(x / sqrt(2)))
    return x * 0.5 * (1.0 + jax.lax.erf(x / jnp.sqrt(2.0).astype(x.dtype)))


# ----------------------------- kernels --------------------------------------


def embed_ln_kernel(wt_ref, pe_ref, g_ref, b_ref, out_ref):
    # (word + token_type) gather-sum comes in pre-added (bf16); add shared
    # positional embedding, LayerNorm in f32, store bf16. Dropout p=0 -> identity.
    x = wt_ref[0].astype(jnp.float32) + pe_ref[0].astype(jnp.float32)   # [S, H]
    out_ref[0] = _layernorm(x, g_ref[...], b_ref[...]).astype(out_ref.dtype)


def bert_layer_kernel(num_heads,
                      xq_ref, xf_ref, mask_ref,
                      wq_ref, bq_ref, wk_ref, bk_ref, wv_ref, bv_ref,
                      wao_ref, bao_ref, g1_ref, b1_ref,
                      wi_ref, bi_ref, wo_ref, bo_ref, g2_ref, b2_ref,
                      out_ref):
    f32, bf16 = jnp.float32, jnp.bfloat16

    xq = xq_ref[0]                       # [TQ, H] bf16  (query rows / residual)
    xf = xf_ref[0]                       # [S,  H] bf16  (full sequence for K/V)
    mask = mask_ref[0]                   # [1,  S] f32   additive mask
    TQ, H = xq.shape
    dh = H // num_heads
    scale = jnp.float32(1.0 / math.sqrt(dh))

    # QKV projections: bf16 operands, f32 accumulation, back to bf16 for the MXU.
    q = (jnp.dot(xq, wq_ref[...], preferred_element_type=f32) + bq_ref[...]).astype(bf16)
    k = (jnp.dot(xf, wk_ref[...], preferred_element_type=f32) + bk_ref[...]).astype(bf16)
    v = (jnp.dot(xf, wv_ref[...], preferred_element_type=f32) + bv_ref[...]).astype(bf16)

    # Multi-head attention; softmax stats in f32; contexts are concatenated so
    # the output projection is a single full-K matmul.
    dn = (((1,), (1,)), ((), ()))        # contract last axes of q_h and k_h (no .T)
    ctx_heads = []
    for h in range(num_heads):
        sl = slice(h * dh, (h + 1) * dh)
        qh, kh, vh = q[:, sl], k[:, sl], v[:, sl]                       # [*, dh] bf16
        s_h = jax.lax.dot_general(qh, kh, dn, preferred_element_type=f32)
        s_h = s_h * scale + mask                                        # [TQ, S] f32
        s_h = s_h - jnp.max(s_h, axis=-1, keepdims=True)
        e = jnp.exp(s_h)
        p = e * pl.reciprocal(jnp.sum(e, axis=-1, keepdims=True), approx=True)
        ctx_heads.append(jnp.dot(p.astype(bf16), vh, preferred_element_type=f32))
    ctx = jnp.concatenate(ctx_heads, axis=-1).astype(bf16)              # [TQ, H]

    attn_out = jnp.dot(ctx, wao_ref[...], preferred_element_type=f32) + bao_ref[...]
    h1 = _layernorm(attn_out + xq.astype(f32), g1_ref[...], b1_ref[...])   # residual + LN

    inter = _gelu(jnp.dot(h1.astype(bf16), wi_ref[...],
                          preferred_element_type=f32) + bi_ref[...])       # [TQ, INTER]
    ffn_out = jnp.dot(inter.astype(bf16), wo_ref[...],
                      preferred_element_type=f32) + bo_ref[...]
    h2 = _layernorm(ffn_out + h1, g2_ref[...], b2_ref[...])                # residual + LN

    out_ref[0] = h2.astype(out_ref.dtype)


def classifier_kernel(x_ref, w_ref, b_ref, out_ref):
    # lane-dense (padded to 128) logits, f32 out
    out_ref[0] = (jnp.dot(x_ref[0], w_ref[...], preferred_element_type=jnp.float32)
                  + b_ref[...]).astype(out_ref.dtype)


# ----------------------------- wrappers -------------------------------------


def _param_spec(a):
    nd = a.ndim
    return pl.BlockSpec(a.shape, lambda *_, _nd=nd: (0,) * _nd)


def embeddings_forward(input_ids, token_type_ids, params):
    B, S = input_ids.shape
    H = params["word_emb"].shape[1]
    # gathers are glue (plain JAX); word + token_type folded into one add so only
    # one [B,S,H] tensor is streamed; positional embedding is a shared [1,S,H] block.
    wt = (jnp.take(params["word_emb"], input_ids, axis=0)
          + jnp.take(params["type_emb"], token_type_ids, axis=0))        # [B,S,H] bf16
    pe = params["pos_emb"][:S][None, :, :]                               # [1,S,H] bf16

    act_spec = pl.BlockSpec((1, S, H), lambda b: (b, 0, 0))
    pe_spec = pl.BlockSpec((1, S, H), lambda b: (0, 0, 0))
    return pl.pallas_call(
        embed_ln_kernel,
        grid=(B,),
        in_specs=[act_spec, pe_spec,
                  _param_spec(params["emb_ln_g"]), _param_spec(params["emb_ln_b"])],
        out_specs=act_spec,
        out_shape=jax.ShapeDtypeStruct((B, S, H), jnp.bfloat16),
        compiler_params=pltpu.CompilerParams(dimension_semantics=("parallel",),
                                             vmem_limit_bytes=VMEM_LIMIT),
    )(wt, pe, params["emb_ln_g"], params["emb_ln_b"])


def bert_layer_forward(x, ext_mask, lp, num_heads, *, tq=128):
    B, S, H = x.shape
    tq = min(tq, S)
    assert S % tq == 0, "sequence length must divide the query tile"
    grid = (B, S // tq)

    xq_spec = pl.BlockSpec((1, tq, H), lambda b, qt: (b, qt, 0))   # query rows / residual
    xf_spec = pl.BlockSpec((1, S, H), lambda b, qt: (b, 0, 0))     # full sequence for K/V
    mask_spec = pl.BlockSpec((1, 1, S), lambda b, qt: (b, 0, 0))
    wkeys = ("wq", "bq", "wk", "bk", "wv", "bv", "wao", "bao", "g1", "b1",
             "wi", "bi", "wo", "bo", "g2", "b2")
    weights = [lp[k] for k in wkeys]

    return pl.pallas_call(
        functools.partial(bert_layer_kernel, num_heads),
        grid=grid,
        in_specs=[xq_spec, xf_spec, mask_spec] + [_param_spec(w) for w in weights],
        out_specs=xq_spec,
        out_shape=jax.ShapeDtypeStruct((B, S, H), jnp.bfloat16),
        compiler_params=pltpu.CompilerParams(
            dimension_semantics=("parallel", "parallel"),
            vmem_limit_bytes=VMEM_LIMIT),
    )(x, x, ext_mask, *weights)


def classifier_forward(x, w, b, n_class):
    B, S, H = x.shape
    ncp = pl.cdiv(n_class, 128) * 128                 # pad to lane-dense width
    w_pad = jnp.zeros((H, ncp), w.dtype).at[:, :n_class].set(w)
    b_pad = jnp.zeros((1, ncp), b.dtype).at[:, :n_class].set(b)

    act_spec = pl.BlockSpec((1, S, H), lambda bb: (bb, 0, 0))
    out_spec = pl.BlockSpec((1, S, ncp), lambda bb: (bb, 0, 0))
    logits_pad = pl.pallas_call(
        classifier_kernel,
        grid=(B,),
        in_specs=[act_spec, _param_spec(w_pad), _param_spec(b_pad)],
        out_specs=out_spec,
        out_shape=jax.ShapeDtypeStruct((B, S, ncp), jnp.float32),
        compiler_params=pltpu.CompilerParams(dimension_semantics=("parallel",),
                                             vmem_limit_bytes=VMEM_LIMIT),
    )(x, w_pad, b_pad)
    return logits_pad[:, :, :n_class]


def bert_for_classification_forward(input_ids, token_type_ids, attention_mask,
                                    params, num_heads):
    # extended_attention_mask = (1 - mask) * -10000, shape [B, 1, S], f32
    ext_mask = ((1.0 - attention_mask.astype(jnp.float32)) * -10000.0)[:, None, :]
    h = embeddings_forward(input_ids, token_type_ids, params)
    for lp in params["layers"]:
        h = bert_layer_forward(h, ext_mask, lp, num_heads)
    # dropout p=0.0 -> identity
    logits = classifier_forward(h, params["cls_w"], params["cls_b"],
                                params["cls_w"].shape[1])
    return logits


# ----------------------------- parameters -----------------------------------


def init_bert_params(key, *, vocab, hidden, inter, n_layers, n_class,
                     max_pos, type_vocab):
    std = 0.02
    wdt = jnp.bfloat16   # GEMM / embedding weights
    pdt = jnp.float32    # biases and LayerNorm params

    def nrm(k, shape, dt=wdt):
        return (std * jax.random.normal(k, shape, jnp.float32)).astype(dt)

    keys = jax.random.split(key, 4 + n_layers)
    params = {
        "word_emb": nrm(keys[0], (vocab, hidden)),
        "pos_emb": nrm(keys[1], (max_pos, hidden)),
        "type_emb": nrm(keys[2], (type_vocab, hidden)),
        "emb_ln_g": jnp.ones((1, hidden), pdt),
        "emb_ln_b": jnp.zeros((1, hidden), pdt),
        "cls_w": nrm(keys[3], (hidden, n_class)),
        "cls_b": jnp.zeros((1, n_class), pdt),
        "layers": [],
    }
    for l in range(n_layers):
        lk = jax.random.split(keys[4 + l], 6)
        params["layers"].append({
            "wq": nrm(lk[0], (hidden, hidden)), "bq": jnp.zeros((1, hidden), pdt),
            "wk": nrm(lk[1], (hidden, hidden)), "bk": jnp.zeros((1, hidden), pdt),
            "wv": nrm(lk[2], (hidden, hidden)), "bv": jnp.zeros((1, hidden), pdt),
            "wao": nrm(lk[3], (hidden, hidden)), "bao": jnp.zeros((1, hidden), pdt),
            "g1": jnp.ones((1, hidden), pdt), "b1": jnp.zeros((1, hidden), pdt),
            "wi": nrm(lk[4], (hidden, inter)), "bi": jnp.zeros((1, inter), pdt),
            "wo": nrm(lk[5], (inter, hidden)), "bo": jnp.zeros((1, hidden), pdt),
            "g2": jnp.ones((1, hidden), pdt), "b2": jnp.zeros((1, hidden), pdt),
        })
    return params


# ----------------------------- main ------------------------------------------

if __name__ == "__main__":
    # small, forward-consistent shapes
    B, S = 2, 8                 # batch, seq
    H, NH = 32, 4               # hidden, attention heads
    INTER = 64                  # intermediate size
    NC = 5                      # n_class
    V = 64                      # vocab size
    NL = 2                      # num hidden layers
    MAX_POS, TYPE_VOCAB = 16, 2

    key = jax.random.PRNGKey(0)
    k_params, k_ids, k_mask = jax.random.split(key, 3)

    params = init_bert_params(k_params, vocab=V, hidden=H, inter=INTER,
                              n_layers=NL, n_class=NC,
                              max_pos=MAX_POS, type_vocab=TYPE_VOCAB)

    input_ids = jax.random.randint(k_ids, (B, S), 0, V, dtype=jnp.int32)
    token_type_ids = jnp.zeros((B, S), jnp.int32)
    # mask with a couple of padded positions in the second sequence
    attention_mask = jnp.ones((B, S), jnp.float32).at[1, S - 2:].set(0.0)

    logits = bert_for_classification_forward(input_ids, token_type_ids,
                                             attention_mask, params, NH)
    jax.block_until_ready(logits)
    assert logits.shape == (B, S, NC) and logits.dtype == jnp.float32
    print("KERNEL_OK")
</pallas_src>

<mosaic_0001>
module attributes {stable_mosaic.version = 11 : i64} {
  func.func @embed_ln_kernel(%arg0: i32, %arg1: memref<1x8x32xbf16, #tpu.memory_space<vmem>>, %arg2: memref<1x8x32xbf16, #tpu.memory_space<vmem>>, %arg3: memref<1x32xf32, #tpu.memory_space<vmem>>, %arg4: memref<1x32xf32, #tpu.memory_space<vmem>>, %arg5: memref<1x8x32xbf16, #tpu.memory_space<vmem>>) attributes {dimension_semantics = [#tpu.dimension_semantics<parallel>], iteration_bounds = array<i64: 2>, scalar_prefetch = 0 : i64, scratch_operands = 0 : i64, tpu.core_type = #tpu.core_type<tc>, window_params = [{transform_indices = @transform_0, window_bounds = array<i64: 1, 8, 32>}, {pipeline_mode = #tpu.pipeline_mode<synchronous>, transform_indices = @transform_1, window_bounds = array<i64: 1, 8, 32>}, {pipeline_mode = #tpu.pipeline_mode<synchronous>, transform_indices = @transform_2, window_bounds = array<i64: 1, 32>}, {pipeline_mode = #tpu.pipeline_mode<synchronous>, transform_indices = @transform_3, window_bounds = array<i64: 1, 32>}, {transform_indices = @transform_4, window_bounds = array<i64: 1, 8, 32>}]} {
    %c0 = arith.constant 0 : index
    %c0_0 = arith.constant 0 : index
    %c0_1 = arith.constant 0 : index
    %0 = vector.load %arg1[%c0, %c0_0, %c0_1] : memref<1x8x32xbf16, #tpu.memory_space<vmem>>, vector<1x8x32xbf16>
    %1 = vector.shape_cast %0 : vector<1x8x32xbf16> to vector<8x32xbf16>
    %2 = arith.extf %1 : vector<8x32xbf16> to vector<8x32xf32>
    %c0_2 = arith.constant 0 : index
    %c0_3 = arith.constant 0 : index
    %c0_4 = arith.constant 0 : index
    %3 = vector.load %arg2[%c0_2, %c0_3, %c0_4] : memref<1x8x32xbf16, #tpu.memory_space<vmem>>, vector<1x8x32xbf16>
    %4 = vector.shape_cast %3 : vector<1x8x32xbf16> to vector<8x32xbf16>
    %5 = arith.extf %4 : vector<8x32xbf16> to vector<8x32xf32>
    %6 = arith.addf %2, %5 : vector<8x32xf32>
    %c0_5 = arith.constant 0 : index
    %c0_6 = arith.constant 0 : index
    %7 = vector.load %arg3[%c0_5, %c0_6] : memref<1x32xf32, #tpu.memory_space<vmem>>, vector<1x32xf32>
    %c0_7 = arith.constant 0 : index
    %c0_8 = arith.constant 0 : index
    %8 = vector.load %arg4[%c0_7, %c0_8] : memref<1x32xf32, #tpu.memory_space<vmem>>, vector<1x32xf32>
    %cst = arith.constant dense<0.000000e+00> : vector<8xf32>
    %9 = vector.multi_reduction <add>, %6, %cst [1] : vector<8x32xf32> to vector<8xf32>
    %10 = vector.shape_cast %9 : vector<8xf32> to vector<8x1xf32>
    %cst_9 = arith.constant 3.200000e+01 : f32
    %11 = vector.broadcast %cst_9 : f32 to vector<8x1xf32>
    %12 = arith.divf %10, %11 : vector<8x1xf32>
    %13 = vector.broadcast %12 : vector<8x1xf32> to vector<8x32xf32>
    %14 = arith.subf %6, %13 : vector<8x32xf32>
    %15 = arith.mulf %14, %14 : vector<8x32xf32>
    %cst_10 = arith.constant dense<0.000000e+00> : vector<8xf32>
    %16 = vector.multi_reduction <add>, %15, %cst_10 [1] : vector<8x32xf32> to vector<8xf32>
    %17 = vector.shape_cast %16 : vector<8xf32> to vector<8x1xf32>
    %cst_11 = arith.constant 3.200000e+01 : f32
    %18 = vector.broadcast %cst_11 : f32 to vector<8x1xf32>
    %19 = arith.divf %17, %18 : vector<8x1xf32>
    %20 = vector.broadcast %12 : vector<8x1xf32> to vector<8x32xf32>
    %21 = arith.subf %6, %20 : vector<8x32xf32>
    %cst_12 = arith.constant 9.99999996E-13 : f32
    %22 = vector.broadcast %cst_12 : f32 to vector<8x1xf32>
    %23 = arith.addf %19, %22 : vector<8x1xf32>
    %24 = math.rsqrt %23 : vector<8x1xf32>
    %25 = vector.broadcast %24 : vector<8x1xf32> to vector<8x32xf32>
    %26 = arith.mulf %21, %25 : vector<8x32xf32>
    %27 = vector.broadcast %7 : vector<1x32xf32> to vector<8x32xf32>
    %28 = arith.mulf %26, %27 : vector<8x32xf32>
    %29 = vector.broadcast %8 : vector<1x32xf32> to vector<8x32xf32>
    %30 = arith.addf %28, %29 : vector<8x32xf32>
    %31 = arith.truncf %30 : vector<8x32xf32> to vector<8x32xbf16>
    %c0_13 = arith.constant 0 : index
    %c0_14 = arith.constant 0 : index
    %c0_15 = arith.constant 0 : index
    %32 = vector.load %arg5[%c0_13, %c0_14, %c0_15] : memref<1x8x32xbf16, #tpu.memory_space<vmem>>, vector<1x8x32xbf16>
    %33 = vector.shape_cast %32 : vector<1x8x32xbf16> to vector<8x32xbf16>
    %34 = vector.shape_cast %31 : vector<8x32xbf16> to vector<1x8x32xbf16>
    tpu.vector_store %arg5[%c0_13, %c0_14, %c0_15], %34 {strides = array<i32>} : memref<1x8x32xbf16, #tpu.memory_space<vmem>>, vector<1x8x32xbf16>,
    return
  }
  func.func @transform_0(%arg0: i32) -> (i32, i32, i32) {
    %c0_i32 = arith.constant 0 : i32
    %c0_i32_0 = arith.constant 0 : i32
    %c0_i32_1 = arith.constant 0 : i32
    return %arg0, %c0_i32, %c0_i32_0 : i32, i32, i32
  }
  func.func @transform_1(%arg0: i32) -> (i32, i32, i32) {
    %c0_i32 = arith.constant 0 : i32
    %c0_i32_0 = arith.constant 0 : i32
    %c0_i32_1 = arith.constant 0 : i32
    %c0_i32_2 = arith.constant 0 : i32
    return %c0_i32, %c0_i32_0, %c0_i32_1 : i32, i32, i32
  }
  func.func @transform_2(%arg0: i32) -> (i32, i32) {
    %c0_i32 = arith.constant 0 : i32
    %c0_i32_0 = arith.constant 0 : i32
    %c0_i32_1 = arith.constant 0 : i32
    return %c0_i32, %c0_i32_0 : i32, i32
  }
  func.func @transform_3(%arg0: i32) -> (i32, i32) {
    %c0_i32 = arith.constant 0 : i32
    %c0_i32_0 = arith.constant 0 : i32
    %c0_i32_1 = arith.constant 0 : i32
    return %c0_i32, %c0_i32_0 : i32, i32
  }
  func.func @transform_4(%arg0: i32) -> (i32, i32, i32) {
    %c0_i32 = arith.constant 0 : i32
    %c0_i32_0 = arith.constant 0 : i32
    %c0_i32_1 = arith.constant 0 : i32
    return %arg0, %c0_i32, %c0_i32_0 : i32, i32, i32
  }
}

</mosaic_0001>

<bundles_post_ra>
// kernel: tpu_custom_call.1
= control target key start
LH: loop header
LB: loop body
LE: loop exit
PB: predicated region body
PF: predicated region fallthrough
CT: control target
= control target key end

     0   :  { %9 = vsyncpa [#allocation3], 0  ;;  %s979_s0 = inlined_call_operand.hbm [shape: bf16[2,8,32], index: 0, kind: input, shape index: {}]   ;;  %s980_s1 = inlined_call_operand.hbm [shape: bf16[1,8,32], index: 1, kind: input, shape index: {}]   ;;  %s981_s2 = inlined_call_operand.hbm [shape: f32[1,32], index: 2, kind: input, shape index: {}]   ;;  %s982_s3 = inlined_call_operand.hbm [shape: f32[1,32], index: 3, kind: input, shape index: {}]   ;;  %s983_s4 = inlined_call_operand.hbm [shape: bf16[2,8,32], index: 4, kind: output, shape index: {}]  }
   0x1   :  { %11 = vsyncpa [#allocation3 + $0x1], 0 }
   0x2   :  { %12 = vsyncpa [#allocation6], 0 }
   0x3   :  { %13 = vsyncpa [#allocation9], 0 }
   0x4   :  { %14 = vsyncpa [#allocation4], 0 }
   0x5   :  { %16 = vsyncpa [#allocation4 + $0x1], 0  ;;  %s722_s15 = smov 0   ;;  %s724_s16 = smov 0  }
   0x6   :  { %s726_s17 = smov 0   ;;  %s728_s18 = smov 0  }
   0x7 LB: > { %s743_s19 = sadd.s32 4294967295, %s690_s18   ;;  %s403_s20 = sadd.s32 4294967294, %s690_s18   ;;  %s690_s18 = sphi %s728_s18, %s1006_s18   ;;  %s686_s17 = sphi %s726_s17, %s1005_s17   ;;  %s682_s16 = sphi %s724_s16, %s1004_s16   ;;  %s678_s15 = sphi %s722_s15, %s1003_s15  }
   0x8   : > { %p42_p0 = scmp.ne.s32.totalorder %s682_s16, %s678_s15  ;;  %p984_p1 = scmp.eq.s32.totalorder %s743_s19, 0 }
   0x9   : > { %p135_p3 = scmp.eq.s32.totalorder %s403_s20, 1  ;;  %p404_p5 = scmp.ge.s32.totalorder %s690_s18, 1 }
   0xa   : > { %p752_p4 = por %p984_p1, %p42_p0  ;;  %p142_p7 = scmp.lt.s32.totalorder %s690_s18, 3 }
   0xb   : > { %p757_p6 = por %p135_p3, %p42_p0  ;;  %s692_s24 = smov [#allocation5]  }
   0xc   : > { %s987_s21 = scalar_select %p752_p4, 1, 0 }
   0xd   : > { %s988_s22 = scalar_select %p757_p6, 1, 0 }
   0xe   : > { %p762_p8 = pnand %p404_p5, %p142_p7  ;;  %s155_s25 = sshll.u32 %s692_s24, 4  ;;  %s156_s25 = int_to_ptr.vmem [resolvable:$true] %s155_s25 }
   0xf   : > { %s693_s26 = smov [#allocation7]   ;;  %s694_s29 = smov [#allocation8]  }
  0x10   : > { %s989_s23 = scalar_select %p762_p8, 1, 0 }
  0x11   : > { %p439_p10 = pneg %p762_p8  ;;  %s166_s27 = sshll.u32 %s693_s26, 4  ;;  %s775_s27 = int_to_ptr.vmem [resolvable:$true] %s166_s27 }
  0x12   : > { %s177_s30 = sshll.u32 %s694_s29, 4  ;;  %s502_s7 = scalar_lea.hbm %s980_s1, 64  ;;  %s777_s30 = int_to_ptr.vmem [resolvable:$true] %s177_s30 }
  0x13   : > { %p771_p11 = pnand %p439_p10, %p984_p1  ;;  %p503_p12 = scmp.ne.s32.totalorder %s980_s1, %s502_s7 }
  0x14   : > { %p509_p5 = scmp.lt.u32.totalorder %s502_s7, %s980_s1 }
  0x15   : > { %p787_p13 = pneg %p771_p11 }
  0x17   : > { %p505_p0 = pnand %p787_p13, %p503_p12 }
  0x19   : > { %p506_p3 = pneg %p505_p0 }
  0x1b   : > { %p511_p7 = pnand %p509_p5, %p506_p3 }
  0x1d   : > { %514 = shalt.err (!%p511_p7)
}
  0x1e   : > { %s515_s13 = scalar_lea.vmem %s156_s25, 64  ;;  %p523_p2 = scmp.lt.s32.totalorder %s156_s25, %s156_s25 }
  0x1f   : > { %p516_p10 = scmp.ne.s32.totalorder %s156_s25, %s515_s13  ;;  %p524_p6 = scmp.lt.s32.totalorder %s515_s13, %s515_s13 }
  0x21   : > { %p518_p9 = pnand %p516_p10, %p787_p13  ;;  %p525_p4 = por %p524_p6, %p523_p2 }
  0x23   : > { %p519_p1 = pneg %p518_p9 }
  0x25   : > { %p526_p8 = pnand %p525_p4, %p519_p1 }
  0x27   : > { %529 = shalt.err (!%p526_p8)
}
  0x28   : > { %442 = dma.hbm_to_vmem [thread:$0]  (!%p771_p11), %s980_s1, 64, %s156_s25, [#allocation6]  }
  0x29   : > { %s530_s29 = scalar_lea.hbm %s981_s2, 16 }
  0x2a   : > { %p531_p9 = scmp.ne.s32.totalorder %s981_s2, %s530_s29  ;;  %p537_p1 = scmp.lt.u32.totalorder %s530_s29, %s981_s2 }
  0x2c   : > { %p533_p12 = pnand %p531_p9, %p787_p13 }
  0x2e   : > { %p534_p2 = pneg %p533_p12 }
  0x30   : > { %p539_p4 = pnand %p537_p1, %p534_p2 }
  0x32   : > { %542 = shalt.err (!%p539_p4)
}
  0x33   : > { %s543_s25 = scalar_lea.vmem %s775_s27, 16  ;;  %s550_s9 = scalar_lea.vmem %s775_s27, 32 }
  0x34   : > { %p544_p6 = scmp.ne.s32.totalorder %s775_s27, %s543_s25  ;;  %p551_p3 = scmp.lt.s32.totalorder %s775_s27, %s775_s27 }
  0x35   : > { %p552_p5 = scmp.lt.s32.totalorder %s550_s9, %s543_s25 }
  0x36   : > { %p546_p8 = pnand %p544_p6, %p787_p13 }
  0x37   : > { %p553_p7 = por %p552_p5, %p551_p3 }
  0x38   : > { %p547_p0 = pneg %p546_p8 }
  0x3a   : > { %p554_p10 = pnand %p553_p7, %p547_p0 }
  0x3c   : > { %557 = shalt.err (!%p554_p10)
}
  0x3d   : > { %445 = dma.hbm_to_vmem [thread:$0]  (!%p771_p11), %s981_s2, 16, %s775_s27, [#allocation6]  }
  0x3e   : > { %s558_s20 = scalar_lea.hbm %s982_s3, 16 }
  0x3f   : > { %p559_p9 = scmp.ne.s32.totalorder %s982_s3, %s558_s20  ;;  %p565_p1 = scmp.lt.u32.totalorder %s558_s20, %s982_s3 }
  0x41   : > { %p561_p12 = pnand %p559_p9, %p787_p13 }
  0x43   : > { %p562_p2 = pneg %p561_p12 }
  0x45   : > { %p567_p4 = pnand %p565_p1, %p562_p2 }
  0x47   : > { %570 = shalt.err (!%p567_p4)
}
  0x48   : > { %s571_s27 = scalar_lea.vmem %s777_s30, 16  ;;  %s578_s6 = scalar_lea.vmem %s777_s30, 32 }
  0x49   : > { %p572_p6 = scmp.ne.s32.totalorder %s777_s30, %s571_s27  ;;  %p579_p3 = scmp.lt.s32.totalorder %s777_s30, %s777_s30 }
  0x4a   : > { %p580_p5 = scmp.lt.s32.totalorder %s578_s6, %s571_s27 }
  0x4b   : > { %p574_p8 = pnand %p572_p6, %p787_p13 }
  0x4c   : > { %p581_p7 = por %p580_p5, %p579_p3 }
  0x4d   : > { %p575_p0 = pneg %p574_p8 }
  0x4f   : > { %p582_p10 = pnand %p581_p7, %p575_p0 }
  0x51   : > { %585 = shalt.err (!%p582_p10)
}
  0x52   : > { %448 = dma.hbm_to_vmem [thread:$0]  (!%p771_p11), %s982_s3, 16, %s777_s30, [#allocation9]  }
  0x53   : > { %s852_s10 = sadd.s32 1, %s690_s18   ;;  %s29_s25 = sadd.s32 1, %s686_s17 }
  0x54   : > { %s26_s28 = ssub.s32 %s690_s18, %s852_s10  ;;  %p36_p9 = scmp.ne.s32.totalorder %s686_s17, %s682_s16 }
  0x55   : > { %p27_p13 = scmp.eq.s32.totalorder %s26_s28, 0  ;;  %p37_p12 = scmp.eq.s32.totalorder %s690_s18, 0 }
  0x56   : > { %p460_p2 = scmp.lt.s32.totalorder %s690_s18, 2  ;;  %p992_p4 = scmp.eq.s32.totalorder %s743_s19, 1 }
  0x57   : > { %s862_s9 = scalar_select %p27_p13, %s686_s17, %s29_s25  }
  0x58   : > { %p38_p1 = por %p37_p12, %p36_p9  ;;  %p866_p6 = por %p992_p4, %p36_p9 }
  0x59   : > { %s188_s12 = sand.u32 1, %s686_s17   ;;  %s410_s13 = sshll.u32 %s690_s18, 6 }
  0x5a   : > { %s409_s30 = sshll.u32 %s188_s12, 2  ;;  %s875_s24 = scalar_lea.hbm %s979_s0, %s410_s13 }
  0x5b   : > { %s192_s26 = scalar_lea.vmem [#allocation2], %s409_s30  ;;  %p877_p11 = pnand %p460_p2, %p38_p1 }
  0x5c   : > { %s199_s29 = sshll.u32 %s192_s26, 4  ;;  %s189_s27 = scalar_lea.sflag [#allocation3], %s188_s12  ;;  %s881_s29 = int_to_ptr.vmem [resolvable:$true] %s199_s29 }
  0x5d   : > { %s586_s6 = scalar_lea.hbm %s875_s24, 64  ;;  %p588_p0 = pneg %p877_p11 }
  0x5e   : > { %p587_p8 = scmp.ne.s32.totalorder %s875_s24, %s586_s6  ;;  %s591_s28 = scalar_lea.hbm %s979_s0, 128 }
  0x5f   : > { %p592_p7 = scmp.lt.u32.totalorder %s875_s24, %s979_s0  ;;  %p593_p10 = scmp.lt.u32.totalorder %s591_s28, %s586_s6 }
  0x60   : > { %p589_p3 = pnand %p588_p0, %p587_p8  ;;  %p595_p9 = scmp.lt.u32.totalorder %s586_s6, %s875_s24 }
  0x61   : > { %p594_p13 = por %p593_p10, %p592_p7 }
  0x62   : > { %p590_p5 = pneg %p589_p3 }
  0x63   : > { %p596_p12 = por %p595_p9, %p594_p13 }
  0x65   : > { %p597_p2 = pnand %p596_p12, %p590_p5 }
  0x67   : > { %600 = shalt.err (!%p597_p2)
}
  0x68   : > { %s601_s12 = scalar_lea.vmem %s881_s29, 64  ;;  %s695_s30 = smov [#allocation2]  }
  0x69   : > { %p602_p1 = scmp.ne.s32.totalorder %s881_s29, %s601_s12  ;;  %s606_s14 = sshll.u32 %s695_s30, 4  ;;  %s607_s14 = int_to_ptr.vmem [resolvable:$false] %s606_s14 }
  0x6a   : > { %s608_s20 = scalar_lea.vmem %s607_s14, 128  ;;  %p609_p3 = scmp.lt.s32.totalorder %s881_s29, %s607_s14 }
  0x6b   : > { %p604_p4 = pnand %p602_p1, %p588_p0  ;;  %p610_p7 = scmp.lt.s32.totalorder %s608_s20, %s601_s12 }
  0x6d   : > { %p605_p8 = pneg %p604_p4  ;;  %p611_p10 = por %p610_p7, %p609_p3 }
  0x6f   : > { %p612_p13 = pnand %p611_p10, %p605_p8 }
  0x71   : > { %615 = shalt.err (!%p612_p13)
}
  0x72   : > { %452 = dma.hbm_to_vmem [thread:$0]  (!%p877_p11), %s875_s24, 64, %s881_s29, %s189_s27  }
  0x73   : > { %p995_p5 = scmp.ne.s32.totalorder %s989_s23, 0 }
  0x74   : > { %s911_s26 = sand.u32 (!%p995_p5), 1, %s682_s16   ;;  %p996_p0 = scmp.ne.s32.totalorder (!%p995_p5), %s987_s21, 0 }
  0x75   : > { %208 = sbr.rel (%p995_p5) target bundleno = 466 (0x1d2), region = 36  ;;  %s412_s6 = sshll.u32 (!%p995_p5), %s911_s26, 2 }
  0x76   : > { %s211_s7 = scalar_lea.sflag (!%p995_p5), [#allocation3], %s911_s26  ;;  %s214_s8 = scalar_lea.vmem (!%p995_p5), [#allocation2], %s412_s6 }
  0x7c   : > { %661 = dma.done.wait (%p996_p0), %s211_s7, 64  }
  0x7d   : > { %663 = vsyncadd (%p996_p0), %s211_s7, 4294967232  ;;  %p997_p11 = scmp.eq.s32.totalorder %s743_s19, 0 }
  0x7f   : > { %665 = dma.done.wait (%p997_p11), [#allocation6], 80   ;;  %p998_p9 = pmov %p997_p11 }
  0x81   : > { %667 = vsyncadd (%p998_p9), [#allocation6], 4294967216  ;;  %p999_p12 = pmov %p998_p9 }
  0x82   : > { %p1000_p2 = pmov %p998_p9 }
  0x83   : > { %669 = dma.done.wait (%p999_p12), [#allocation9], 16  }
  0x84   : > { %671 = vsyncadd (%p1000_p2), [#allocation9], 4294967280  ;;  %v251_v0 = vld [vmem:[%s214_s8] sm:$0xf]  ;;  %v253_v1 = vld [vmem:[#allocation5] sm:$0xf] }
  0x85   : > { %v252_v2 = vunpack.c.l.bf16 %v251_v0  ;;  %v254_v3 = vunpack.c.l.bf16 %v253_v1  ;;  %vm258_vm0 = vcmask 261120   ;;  %v417_v15 = vld [vmem:[#allocation7] ss:$0 sm:$0xff]  ;;  %v418_v17 = vld [vmem:[#allocation8] ss:$0 sm:$0xff]  ;;  %s420_s21 = sshll.u32 %s743_s19, 6 }
  0x86   : > { %s250_s23 = scalar_lea.vmem [#allocation10], %s412_s6  ;;  %vm288_vm1 = vcmask 257024   ;;  %s935_s27 = scalar_lea.hbm %s983_s4, %s420_s21 }
  0x87   : > { %v255_v4 = vadd.f32 %v254_v3, %v252_v2  ;;  %s304_s24 = sshll.u32 %s250_s23, 4  ;;  %s291_s28 = scalar_lea.sflag [#allocation4], %s911_s26  ;;  %s937_s24 = int_to_ptr.vmem [resolvable:$true] %s304_s24 }
  0x88   : > { %s616_s25 = scalar_lea.vmem %s937_s24, 64  ;;  %s696_s19 = smov [#allocation10]  }
  0x89   : > { %v259_v5 = vsel %vm258_vm0, %v255_v4, 0.0  ;;  %p617_p1 = scmp.ne.s32.totalorder %s937_s24, %s616_s25  ;;  %s620_s13 = sshll.u32 %s696_s19, 4  ;;  %s621_s13 = int_to_ptr.vmem [resolvable:$false] %s620_s13 }
  0x8a   : > { %260 = vadd.xlane.f32.xlu0 %v259_v5  ;;  %s622_s12 = scalar_lea.vmem %s621_s13, 128  ;;  %p623_p3 = scmp.lt.s32.totalorder %s937_s24, %s621_s13 }
  0x8b   : > { %p618_p4 = pnand %p617_p1, %p866_p6  ;;  %p624_p7 = scmp.lt.s32.totalorder %s622_s12, %s616_s25 }
  0x8d   : > { %p619_p8 = pneg %p618_p4  ;;  %p625_p10 = por %p624_p7, %p623_p3 }
  0x8f   : > { %p626_p13 = pnand %p625_p10, %p619_p8 }
 0x117   : > { %v261_v6 = vpop.xlane.xlu0 %260 }
 0x118   : > { %v263_v7 = vmul.f32 0.03125, %v261_v6 }
 0x11a   : > { %v264_v8 = vsub.f32 %v255_v4, %v263_v7 }
 0x11c   : > { %v265_v9 = vmul.f32 %v264_v8, %v264_v8 }
 0x11e   : > { %v266_v10 = vsel %vm258_vm0, %v265_v9, 0.0 }
 0x11f   : > { %267 = vadd.xlane.f32.xlu0 %v266_v10 }
 0x1ac   : > { %v268_v11 = vpop.xlane.xlu0 %267 }
 0x1ad   : > { %v269_v12 = vmul.f32 0.03125, %v268_v11 }
 0x1af   : > { %v270_v13 = vadd.f32 1e-12, %v269_v12 }
 0x1b1   : > { %500 = vrsqrt.f32 %v270_v13 }
 0x1bb   : > { %v501_v14 = vpop.eup %500 }
 0x1bc   : > { %v272_v16 = vmul.f32 %v501_v14, %v264_v8 }
 0x1be   : > { %v279_v18 = vmul.f32 %v417_v15, %v272_v16 }
 0x1c0   : > { %v286_v19 = vadd.f32 %v418_v17, %v279_v18 }
 0x1c2   : > { %v287_v20 = vpack.c.bf16 %v286_v19, %v286_v19 }
 0x1c4   : > { %289 = vst.msk [vmem:[%s250_s23] sm:$0xf] %vm288_vm1, %v287_v20 }
 0x1c5   : > { %629 = shalt.err (!%p626_p13)
}
 0x1c6   : > { %s630_s30 = scalar_lea.hbm %s935_s27, 64  ;;  %s634_s26 = scalar_lea.hbm %s983_s4, 128 }
 0x1c7   : > { %p631_p5 = scmp.ne.s32.totalorder %s935_s27, %s630_s30  ;;  %p635_p9 = scmp.lt.u32.totalorder %s935_s27, %s983_s4 }
 0x1c8   : > { %p636_p12 = scmp.lt.u32.totalorder %s634_s26, %s630_s30  ;;  %p638_p1 = scmp.lt.u32.totalorder %s630_s30, %s935_s27 }
 0x1c9   : > { %p632_p0 = pnand %p631_p5, %p866_p6 }
 0x1ca   : > { %p637_p2 = por %p636_p12, %p635_p9 }
 0x1cb   : > { %p633_p11 = pneg %p632_p0 }
 0x1cc   : > { %p639_p4 = por %p638_p1, %p637_p2 }
 0x1ce   : > { %p640_p8 = pnand %p639_p4, %p633_p11 }
 0x1d0   : > { %643 = shalt.err (!%p640_p8)
}
 0x1d1   : > { %437 = dma.vmem_to_hbm [thread:$0]  (%p866_p6), %s937_s24, 64, %s935_s27, %s291_s28  }
 0x1d2 PF: > { %s316_s8 = sand.u32 1, %s678_s15   ;;  %p1001_p3 = scmp.ne.s32.totalorder %s988_s22, 0 }
 0x1d3   : > { %p1002_p7 = scmp.ge.s32.totalorder %s690_s18, 2  ;;  %s317_s21 = scalar_lea.sflag [#allocation4], %s316_s8 }
 0x1d5   : > { %p454_p10 = pnand %p1002_p7, %p1001_p3 }
 0x1d7   : > { %673 = dma.done.wait (!%p454_p10), %s317_s21, 64  }
 0x1d8   : > { %675 = vsyncadd (!%p454_p10), %s317_s21, 4294967232  ;;  %p19_p13 = scmp.ge.s32.totalorder %s852_s10, 4   ;;  %s1003_s15 = smov %s682_s16 }
 0x1d9   : > { %s1004_s16 = smov %s686_s17  ;;  %s1005_s17 = smov %s862_s9 }
 0x1da   : > { %s1006_s18 = smov %s852_s10  ;;  %21 = sbr.rel (!%p19_p13) target bundleno = 7 (0x7), region = 93 }
 0x1e1   :  { %322 = vsyncpa [#allocation3], 1 }
 0x1e2   :  { %324 = vsyncpa [#allocation3 + $0x1], 1 }
 0x1e3   :  { %325 = vsyncpa [#allocation6], 1 }
 0x1e4   :  { %326 = vsyncpa [#allocation9], 1 }
 0x1e5   :  { %327 = vsyncpa [#allocation4], 1 }
 0x1e6   :  { %329 = vsyncpa [#allocation4 + $0x1], 1 }

</bundles_post_ra>
